<compile_context>
chip_gen: v6e
topology: v6e:2x2x1
jax: 0.10.0
libtpu: 0.0.40
codegen_flags: <defaults>
</compile_context>

<pallas_src>
import functools
import math
from typing import NamedTuple

import jax
import jax.numpy as jnp
from jax.experimental import pallas as pl
from jax.experimental.pallas import tpu as pltpu


# --------------------------------------------------------------------------
# helpers
# --------------------------------------------------------------------------
def _round_up(n, m):
    return ((n + m - 1) // m) * m


class GemmaConfig(NamedTuple):
    vocab_size: int
    max_position_embeddings: int
    num_hidden_layers: int
    num_attention_heads: int
    num_key_value_heads: int
    hidden_size: int
    intermediate_size: int
    head_dim: int
    rms_norm_eps: float
    rope_theta: float


# --------------------------------------------------------------------------
# generic tiled matmul kernel (q/k/v, o_proj, lm_head)
# --------------------------------------------------------------------------
def _matmul_kernel(a_ref, b_ref, o_ref, acc_ref):
    @pl.when(pl.program_id(2) == 0)
    def _():
        acc_ref[...] = jnp.zeros_like(acc_ref)

    acc_ref[...] += jnp.dot(a_ref[...], b_ref[...],
                            preferred_element_type=jnp.float32)

    @pl.when(pl.program_id(2) == pl.num_programs(2) - 1)
    def _():
        o_ref[...] = acc_ref[...].astype(o_ref.dtype)


def matmul(a, b, out_dtype=None):
    """a: [M, K], b: [K, N] -> [M, N]; pads to tile multiples internally."""
    m, k = a.shape
    k2, n = b.shape
    assert k == k2
    out_dtype = a.dtype if out_dtype is None else out_dtype

    tm = min(256, _round_up(m, 8))
    tn = min(256, _round_up(n, 128))
    tk = min(512, _round_up(k, 128))
    mp, np_, kp = _round_up(m, tm), _round_up(n, tn), _round_up(k, tk)
    if (mp, kp) != (m, k):
        a = jnp.pad(a, ((0, mp - m), (0, kp - k)))
    if (kp, np_) != (k, n):
        b = jnp.pad(b, ((0, kp - k), (0, np_ - n)))

    out = pl.pallas_call(
        _matmul_kernel,
        out_shape=jax.ShapeDtypeStruct((mp, np_), out_dtype),
        grid_spec=pltpu.PrefetchScalarGridSpec(
            num_scalar_prefetch=0,
            grid=(mp // tm, np_ // tn, kp // tk),
            in_specs=[
                pl.BlockSpec((tm, tk), lambda i, j, kk: (i, kk)),
                pl.BlockSpec((tk, tn), lambda i, j, kk: (kk, j)),
            ],
            out_specs=pl.BlockSpec((tm, tn), lambda i, j, kk: (i, j)),
            scratch_shapes=[pltpu.VMEM((tm, tn), jnp.float32)],
        ),
        compiler_params=pltpu.CompilerParams(
            dimension_semantics=("parallel", "parallel", "arbitrary")),
    )(a, b)
    if (mp, np_) != (m, n):
        out = out[:m, :n]
    return out


# --------------------------------------------------------------------------
# RMSNorm kernel: x / sqrt(mean(x^2) + eps) * (1 + w), computed in f32
# --------------------------------------------------------------------------
def _rmsnorm_kernel(x_ref, w_ref, o_ref, *, eps):
    x = x_ref[...].astype(jnp.float32)
    var = jnp.mean(x * x, axis=-1, keepdims=True)
    o_ref[...] = (x * jax.lax.rsqrt(var + eps)
                  * (1.0 + w_ref[...].astype(jnp.float32))).astype(o_ref.dtype)


def rmsnorm(x, w, eps):
    """x: [M, H], w: [H] -> [M, H] float32 (matches PyTorch GemmaRMSNorm)."""
    m, h = x.shape
    tm = min(256, _round_up(m, 8))
    mp = _round_up(m, tm)
    if mp != m:
        x = jnp.pad(x, ((0, mp - m), (0, 0)))
    out = pl.pallas_call(
        functools.partial(_rmsnorm_kernel, eps=float(eps)),
        out_shape=jax.ShapeDtypeStruct((mp, h), jnp.float32),
        grid_spec=pltpu.PrefetchScalarGridSpec(
            num_scalar_prefetch=0,
            grid=(mp // tm,),
            in_specs=[
                pl.BlockSpec((tm, h), lambda i: (i, 0)),
                pl.BlockSpec((1, h), lambda i: (0, 0)),
            ],
            out_specs=pl.BlockSpec((tm, h), lambda i: (i, 0)),
        ),
        compiler_params=pltpu.CompilerParams(dimension_semantics=("arbitrary",)),
    )(x, w.reshape(1, h))
    return out[:m] if mp != m else out


# --------------------------------------------------------------------------
# attention core kernel: one (batch, head) per grid step
# --------------------------------------------------------------------------
def _attention_kernel(q_ref, k_ref, v_ref, mask_ref, o_ref, *, scale):
    q = q_ref[0].astype(jnp.float32)           # (S, D)
    k = k_ref[0].astype(jnp.float32)           # (T, D)
    v = v_ref[0].astype(jnp.float32)           # (T, D)
    s = jax.lax.dot_general(q, k, (((1,), (1,)), ((), ())),
                            preferred_element_type=jnp.float32) * scale
    s = s + mask_ref[...]
    s = s - jnp.max(s, axis=-1, keepdims=True)
    p = jnp.exp(s)
    p = p / jnp.sum(p, axis=-1, keepdims=True)
    o_ref[0] = jnp.dot(p, v, preferred_element_type=jnp.float32).astype(o_ref.dtype)


def attention(q, k, v, mask, scale):
    """q,k,v: [B, Hn, S/T, D] (k,v already repeated to Hn heads); mask: [S, T]."""
    b, hn, s_, d = q.shape
    t = k.shape[2]
    qf = q.reshape(b * hn, s_, d)
    kf = k.reshape(b * hn, t, d)
    vf = v.reshape(b * hn, t, d)
    out = pl.pallas_call(
        functools.partial(_attention_kernel, scale=float(scale)),
        out_shape=jax.ShapeDtypeStruct((b * hn, s_, d), jnp.float32),
        grid_spec=pltpu.PrefetchScalarGridSpec(
            num_scalar_prefetch=0,
            grid=(b * hn,),
            in_specs=[
                pl.BlockSpec((1, s_, d), lambda i: (i, 0, 0)),
                pl.BlockSpec((1, t, d), lambda i: (i, 0, 0)),
                pl.BlockSpec((1, t, d), lambda i: (i, 0, 0)),
                pl.BlockSpec((s_, t), lambda i: (0, 0)),
            ],
            out_specs=pl.BlockSpec((1, s_, d), lambda i: (i, 0, 0)),
        ),
        compiler_params=pltpu.CompilerParams(dimension_semantics=("parallel",)),
    )(qf, kf, vf, mask)
    return out.reshape(b, hn, s_, d)


# --------------------------------------------------------------------------
# GemmaMLP kernel (gate/up packed into one [H, 2*I] slab, tanh-GELU, down)
# --------------------------------------------------------------------------
def _gemma_mlp_kernel(x_ref, wgu_ref, wd_ref, o_ref, acc_ref, *, ti):
    j = pl.program_id(1)

    @pl.when(j == 0)
    def _():
        acc_ref[...] = jnp.zeros_like(acc_ref)

    x = x_ref[...]                                               # (tm, H)
    gu = jnp.dot(x, wgu_ref[...], preferred_element_type=jnp.float32)
    gate = gu[:, :ti]
    up = gu[:, ti:]
    h = jax.nn.gelu(gate, approximate=True) * up                 # tanh GELU
    acc_ref[...] += jnp.dot(h.astype(wd_ref.dtype), wd_ref[...],
                            preferred_element_type=jnp.float32)

    @pl.when(j == pl.num_programs(1) - 1)
    def _():
        o_ref[...] = acc_ref[...].astype(o_ref.dtype)


def pick_intermediate_tile(intermediate_size: int) -> int:
    for cand in (512, 256, 128):
        if intermediate_size % cand == 0:
            return cand
    raise ValueError("intermediate_size must be a multiple of 128")


def _pick_row_tile(m: int) -> int:
    if m >= 512:
        return 256
    if m >= 128:
        return 128
    return _round_up(max(m, 1), 8)


def pack_gate_up(wg, wu, ti):
    """Interleave gate/up weights tile-wise into a [H, 2*I] slab (done offline)."""
    h, i = wg.shape
    assert wu.shape == (h, i) and i % ti == 0
    g = wg.reshape(h, i // ti, ti)
    u = wu.reshape(h, i // ti, ti)
    return jnp.concatenate([g, u], axis=-1).reshape(h, 2 * i)


@functools.partial(jax.jit, static_argnames=("ti", "tm", "out_dtype"))
def gemma_mlp(x, wgu, wd, *, ti, tm=None, out_dtype=None):
    """x: [M, H]; wgu: [H, 2*I] (pack_gate_up); wd: [I, H] -> [M, H]."""
    m, h = x.shape
    i = wd.shape[0]
    assert wgu.shape == (h, 2 * i)
    assert i % ti == 0 and ti % 128 == 0
    out_dtype = x.dtype if out_dtype is None else out_dtype

    tm = _pick_row_tile(m) if tm is None else tm
    mp = _round_up(m, tm)
    if mp != m:
        x = jnp.pad(x, ((0, mp - m), (0, 0)))

    grid = (mp // tm, i // ti)
    est = (2 * tm * h * x.dtype.itemsize
           + 2 * h * 2 * ti * wgu.dtype.itemsize
           + 2 * ti * h * wd.dtype.itemsize
           + 2 * tm * h * jnp.dtype(out_dtype).itemsize
           + tm * h * 4)
    vmem_limit = int(min(56 * 2**20, max(32 * 2**20, int(est * 1.25))))

    out = pl.pallas_call(
        functools.partial(_gemma_mlp_kernel, ti=ti),
        out_shape=jax.ShapeDtypeStruct((mp, h), out_dtype),
        grid_spec=pltpu.PrefetchScalarGridSpec(
            num_scalar_prefetch=0,
            grid=grid,
            in_specs=[
                pl.BlockSpec((tm, h), lambda ib, jb: (ib, 0)),
                pl.BlockSpec((h, 2 * ti), lambda ib, jb: (0, jb)),
                pl.BlockSpec((ti, h), lambda ib, jb: (jb, 0)),
            ],
            out_specs=pl.BlockSpec((tm, h), lambda ib, jb: (ib, 0)),
            scratch_shapes=[pltpu.VMEM((tm, h), jnp.float32)],
        ),
        compiler_params=pltpu.CompilerParams(
            dimension_semantics=("parallel", "arbitrary"),
            vmem_limit_bytes=vmem_limit,
        ),
    )(x, wgu, wd)
    return out[:m] if mp != m else out


# --------------------------------------------------------------------------
# RoPE / mask helpers (plain JAX; tiny elementwise work)
# --------------------------------------------------------------------------
def rope_cos_sin(positions, head_dim, base):
    inv_freq = 1.0 / (base ** (jnp.arange(0, head_dim, 2, dtype=jnp.float32)
                               / head_dim))
    freqs = positions[..., None] * inv_freq[None, None, :]      # (B, S, D/2)
    emb = jnp.concatenate([freqs, freqs], axis=-1)
    return jnp.cos(emb), jnp.sin(emb)


def rotate_half(x):
    x1, x2 = jnp.split(x, 2, axis=-1)
    return jnp.concatenate([-x2, x1], axis=-1)


def apply_rope(q, k, cos, sin):
    cos = cos[:, None]       # (B, 1, S, D)
    sin = sin[:, None]
    return q * cos + rotate_half(q) * sin, k * cos + rotate_half(k) * sin


def causal_mask(seq_len):
    return jnp.triu(jnp.full((seq_len, seq_len), -1e30, dtype=jnp.float32), k=1)


# --------------------------------------------------------------------------
# full GemmaForCausalLM forward (prefill, no KV cache) — Pallas path
# --------------------------------------------------------------------------
@functools.partial(jax.jit, static_argnames=("cfg",))
def gemma_forward(params, input_ids, *, cfg):
    B, S = input_ids.shape
    H, D = cfg.hidden_size, cfg.head_dim
    nH, nKV = cfg.num_attention_heads, cfg.num_key_value_heads
    eps = cfg.rms_norm_eps
    groups = nH // nKV
    ti = pick_intermediate_tile(cfg.intermediate_size)
    scale = 1.0 / math.sqrt(D)

    h = jnp.take(params["embed"], input_ids, axis=0).astype(jnp.float32) * (H ** 0.5)
    positions = jnp.broadcast_to(jnp.arange(S, dtype=jnp.float32)[None], (B, S))
    cos, sin = rope_cos_sin(positions, D, cfg.rope_theta)
    mask = causal_mask(S)

    for layer in params["layers"]:
        x2d = h.reshape(B * S, H)
        resid = x2d
        xn = rmsnorm(x2d, layer["input_norm"], eps)

        qkv = matmul(xn, layer["wqkv"], out_dtype=jnp.float32)   # fused q/k/v
        q = qkv[:, :nH * D].reshape(B, S, nH, D).transpose(0, 2, 1, 3)
        k = qkv[:, nH * D:(nH + nKV) * D].reshape(B, S, nKV, D).transpose(0, 2, 1, 3)
        v = qkv[:, (nH + nKV) * D:].reshape(B, S, nKV, D).transpose(0, 2, 1, 3)
        q, k = apply_rope(q, k, cos, sin)
        k = jnp.repeat(k, groups, axis=1)
        v = jnp.repeat(v, groups, axis=1)

        attn = attention(q, k, v, mask, scale)                   # (B, nH, S, D)
        attn2d = attn.transpose(0, 2, 1, 3).reshape(B * S, nH * D)
        x2d = resid + matmul(attn2d, layer["wo"], out_dtype=jnp.float32)

        resid = x2d
        xn = rmsnorm(x2d, layer["post_norm"], eps)
        x2d = resid + gemma_mlp(xn, layer["wgu"], layer["wd"], ti=ti,
                                out_dtype=jnp.float32)
        h = x2d.reshape(B, S, H)

    hn = rmsnorm(h.reshape(B * S, H), params["final_norm"], eps)
    logits = matmul(hn, params["lm_head"], out_dtype=jnp.float32)
    return logits.reshape(B, S, cfg.vocab_size)


# --------------------------------------------------------------------------
# pure-JAX reference (mirrors the PyTorch module)
# --------------------------------------------------------------------------
def rmsnorm_ref(x, w, eps):
    x = x.astype(jnp.float32)
    var = jnp.mean(x * x, axis=-1, keepdims=True)
    return x * jax.lax.rsqrt(var + eps) * (1.0 + w.astype(jnp.float32))


def gemma_mlp_ref(x, wg, wu, wd):
    gate = jnp.dot(x, wg, preferred_element_type=jnp.float32)
    up = jnp.dot(x, wu, preferred_element_type=jnp.float32)
    h = (jax.nn.gelu(gate, approximate=True) * up).astype(wd.dtype)
    return jnp.dot(h, wd, preferred_element_type=jnp.float32)


def gemma_forward_ref(params, input_ids, cfg):
    B, S = input_ids.shape
    H, D = cfg.hidden_size, cfg.head_dim
    nH, nKV = cfg.num_attention_heads, cfg.num_key_value_heads
    eps = cfg.rms_norm_eps
    groups = nH // nKV
    scale = 1.0 / math.sqrt(D)

    h = jnp.take(params["embed"], input_ids, axis=0).astype(jnp.float32) * (H ** 0.5)
    positions = jnp.broadcast_to(jnp.arange(S, dtype=jnp.float32)[None], (B, S))
    cos, sin = rope_cos_sin(positions, D, cfg.rope_theta)
    mask = causal_mask(S)

    for layer in params["layers"]:
        resid = h
        x = rmsnorm_ref(h, layer["input_norm"], eps)
        q = jnp.dot(x, layer["wq"]).reshape(B, S, nH, D).transpose(0, 2, 1, 3)
        k = jnp.dot(x, layer["wk"]).reshape(B, S, nKV, D).transpose(0, 2, 1, 3)
        v = jnp.dot(x, layer["wv"]).reshape(B, S, nKV, D).transpose(0, 2, 1, 3)
        q, k = apply_rope(q, k, cos, sin)
        k = jnp.repeat(k, groups, axis=1)
        v = jnp.repeat(v, groups, axis=1)
        s = jnp.einsum("bhqd,bhkd->bhqk", q, k) * scale + mask[None, None]
        p = jax.nn.softmax(s.astype(jnp.float32), axis=-1)
        attn = jnp.einsum("bhqk,bhkd->bhqd", p, v)
        attn = attn.transpose(0, 2, 1, 3).reshape(B, S, nH * D)
        h = resid + jnp.dot(attn, layer["wo"])
        resid = h
        x = rmsnorm_ref(h, layer["post_norm"], eps)
        h = resid + gemma_mlp_ref(x, layer["wg"], layer["wu"], layer["wd"])

    h = rmsnorm_ref(h, params["final_norm"], eps)
    return jnp.dot(h, params["lm_head"])


# --------------------------------------------------------------------------
# deterministic parameter init
# --------------------------------------------------------------------------
def init_params(key, cfg):
    H, I, D = cfg.hidden_size, cfg.intermediate_size, cfg.head_dim
    nH, nKV, V = cfg.num_attention_heads, cfg.num_key_value_heads, cfg.vocab_size
    ti = pick_intermediate_tile(I)
    keys = jax.random.split(key, 3 + cfg.num_hidden_layers)

    def lin(k, fan_in, shape):
        b = 1.0 / math.sqrt(fan_in)
        return jax.random.uniform(k, shape, jnp.float32, -b, b)

    params = {
        "embed": jax.random.normal(keys[0], (V, H), jnp.float32),
        "final_norm": 0.1 * jax.random.normal(keys[1], (H,), jnp.float32),
        "lm_head": lin(keys[2], H, (H, V)),
        "layers": [],
    }
    for li in range(cfg.num_hidden_layers):
        lk = jax.random.split(keys[3 + li], 9)
        wq = lin(lk[0], H, (H, nH * D))
        wk = lin(lk[1], H, (H, nKV * D))
        wv = lin(lk[2], H, (H, nKV * D))
        wo = lin(lk[3], nH * D, (nH * D, H))
        wg = lin(lk[4], H, (H, I))
        wu = lin(lk[5], H, (H, I))
        wd = lin(lk[6], I, (I, H))
        params["layers"].append({
            "wq": wq, "wk": wk, "wv": wv,
            "wqkv": jnp.concatenate([wq, wk, wv], axis=1),
            "wo": wo,
            "wg": wg, "wu": wu, "wgu": pack_gate_up(wg, wu, ti), "wd": wd,
            "input_norm": 0.1 * jax.random.normal(lk[7], (H,), jnp.float32),
            "post_norm": 0.1 * jax.random.normal(lk[8], (H,), jnp.float32),
        })
    return params


# --------------------------------------------------------------------------
# main
# --------------------------------------------------------------------------
if __name__ == "__main__":
    cfg = GemmaConfig(
        vocab_size=256, max_position_embeddings=64, num_hidden_layers=2,
        num_attention_heads=4, num_key_value_heads=1, hidden_size=128,
        intermediate_size=256, head_dim=32, rms_norm_eps=1e-6,
        rope_theta=10000.0)

    key = jax.random.PRNGKey(0)
    pkey, ikey = jax.random.split(key)
    params = init_params(pkey, cfg)

    batch, seq = 2, 8
    input_ids = jax.random.randint(ikey, (batch, seq), 0, cfg.vocab_size)

    logits = gemma_forward(params, input_ids, cfg=cfg)
    jax.block_until_ready(logits)

    ref = gemma_forward_ref(params, input_ids, cfg)
    assert logits.shape == (batch, seq, cfg.vocab_size)
    max_diff = float(jnp.max(jnp.abs(logits - ref)))
    assert jnp.allclose(logits, ref, atol=3e-2, rtol=3e-2), (
        "mismatch vs reference, max |diff| = %e" % max_diff)

    print("KERNEL_OK")
</pallas_src>

<mosaic_0001>
module attributes {stable_mosaic.version = 11 : i64} {
  func.func @_gemma_mlp_kernel(%arg0: i32, %arg1: i32, %arg2: memref<16x128xf32, #tpu.memory_space<vmem>>, %arg3: memref<128x512xf32, #tpu.memory_space<vmem>>, %arg4: memref<256x128xf32, #tpu.memory_space<vmem>>, %arg5: memref<16x128xf32, #tpu.memory_space<vmem>>, %arg6: memref<16x128xf32, #tpu.memory_space<vmem>>) attributes {dimension_semantics = [#tpu.dimension_semantics<parallel>, #tpu.dimension_semantics<arbitrary>], iteration_bounds = array<i64: 1, 1>, scalar_prefetch = 0 : i64, scratch_operands = 1 : i64, tpu.core_type = #tpu.core_type<tc>, window_params = [{transform_indices = @transform_0, window_bounds = array<i64: 16, 128>}, {transform_indices = @transform_1, window_bounds = array<i64: 128, 512>}, {transform_indices = @transform_2, window_bounds = array<i64: 256, 128>}, {transform_indices = @transform_3, window_bounds = array<i64: 16, 128>}]} {
    %c0_i32 = arith.constant 0 : i32
    %0 = arith.cmpi eq, %arg1, %c0_i32 : i32
    %1 = arith.extui %0 : i1 to i32
    %c0_i32_0 = arith.constant 0 : i32
    %2 = arith.cmpi ne, %1, %c0_i32_0 : i32
    scf.if %2 {
      %cst_17 = arith.constant 0.000000e+00 : f32
      %30 = vector.broadcast %cst_17 : f32 to vector<16x128xf32>
      %c0_18 = arith.constant 0 : index
      %c0_19 = arith.constant 0 : index
      %31 = vector.load %arg6[%c0_18, %c0_19] : memref<16x128xf32, #tpu.memory_space<vmem>>, vector<16x128xf32>
      tpu.vector_store %arg6[%c0_18, %c0_19], %30 {strides = array<i32>} : memref<16x128xf32, #tpu.memory_space<vmem>>, vector<16x128xf32>,
    } else {
    }
    %c0 = arith.constant 0 : index
    %c0_1 = arith.constant 0 : index
    %3 = vector.load %arg2[%c0, %c0_1] : memref<16x128xf32, #tpu.memory_space<vmem>>, vector<16x128xf32>
    %c0_2 = arith.constant 0 : index
    %c0_3 = arith.constant 0 : index
    %4 = vector.load %arg3[%c0_2, %c0_3] : memref<128x512xf32, #tpu.memory_space<vmem>>, vector<128x512xf32>
    %cst = arith.constant dense<0.000000e+00> : vector<16x512xf32>
    %5 = tpu.matmul %3, %4, %cst {dimension_numbers = #tpu.dot_dimension_numbers<[1], [0], [0], [1], [0, 0, 1, 1], [], []>} : vector<16x128xf32>, vector<128x512xf32>, vector<16x512xf32> -> vector<16x512xf32>
    %6 = vector.extract_strided_slice %5 {offsets = [0, 0], sizes = [16, 256], strides = [1, 1]} : vector<16x512xf32> to vector<16x256xf32>
    %7 = vector.extract_strided_slice %5 {offsets = [0, 256], sizes = [16, 256], strides = [1, 1]} : vector<16x512xf32> to vector<16x256xf32>
    %8 = arith.mulf %6, %6 : vector<16x256xf32>
    %9 = arith.mulf %6, %8 : vector<16x256xf32>
    %cst_4 = arith.constant 4.471500e-02 : f32
    %10 = vector.broadcast %cst_4 : f32 to vector<16x256xf32>
    %11 = arith.mulf %10, %9 : vector<16x256xf32>
    %12 = arith.addf %6, %11 : vector<16x256xf32>
    %cst_5 = arith.constant 0.797884583 : f32
    %13 = vector.broadcast %cst_5 : f32 to vector<16x256xf32>
    %14 = arith.mulf %13, %12 : vector<16x256xf32>
    %15 = math.tanh %14 : vector<16x256xf32>
    %cst_6 = arith.constant 1.000000e+00 : f32
    %16 = vector.broadcast %cst_6 : f32 to vector<16x256xf32>
    %17 = arith.addf %16, %15 : vector<16x256xf32>
    %cst_7 = arith.constant 5.000000e-01 : f32
    %18 = vector.broadcast %cst_7 : f32 to vector<16x256xf32>
    %19 = arith.mulf %18, %17 : vector<16x256xf32>
    %20 = arith.mulf %6, %19 : vector<16x256xf32>
    %21 = arith.mulf %20, %7 : vector<16x256xf32>
    %c0_8 = arith.constant 0 : index
    %c0_9 = arith.constant 0 : index
    %22 = vector.load %arg6[%c0_8, %c0_9] : memref<16x128xf32, #tpu.memory_space<vmem>>, vector<16x128xf32>
    %c0_10 = arith.constant 0 : index
    %c0_11 = arith.constant 0 : index
    %23 = vector.load %arg4[%c0_10, %c0_11] : memref<256x128xf32, #tpu.memory_space<vmem>>, vector<256x128xf32>
    %cst_12 = arith.constant dense<0.000000e+00> : vector<16x128xf32>
    %24 = tpu.matmul %21, %23, %cst_12 {dimension_numbers = #tpu.dot_dimension_numbers<[1], [0], [0], [1], [0, 0, 1, 1], [], []>} : vector<16x256xf32>, vector<256x128xf32>, vector<16x128xf32> -> vector<16x128xf32>
    %25 = arith.addf %22, %24 : vector<16x128xf32>
    %c0_13 = arith.constant 0 : index
    %c0_14 = arith.constant 0 : index
    %26 = vector.load %arg6[%c0_13, %c0_14] : memref<16x128xf32, #tpu.memory_space<vmem>>, vector<16x128xf32>
    tpu.vector_store %arg6[%c0_13, %c0_14], %25 {strides = array<i32>} : memref<16x128xf32, #tpu.memory_space<vmem>>, vector<16x128xf32>,
    %c0_i32_15 = arith.constant 0 : i32
    %27 = arith.cmpi eq, %arg1, %c0_i32_15 : i32
    %28 = arith.extui %27 : i1 to i32
    %c0_i32_16 = arith.constant 0 : i32
    %29 = arith.cmpi ne, %28, %c0_i32_16 : i32
    scf.if %29 {
      %c0_17 = arith.constant 0 : index
      %c0_18 = arith.constant 0 : index
      %30 = vector.load %arg6[%c0_17, %c0_18] : memref<16x128xf32, #tpu.memory_space<vmem>>, vector<16x128xf32>
      %c0_19 = arith.constant 0 : index
      %c0_20 = arith.constant 0 : index
      %31 = vector.load %arg5[%c0_19, %c0_20] : memref<16x128xf32, #tpu.memory_space<vmem>>, vector<16x128xf32>
      tpu.vector_store %arg5[%c0_19, %c0_20], %30 {strides = array<i32>} : memref<16x128xf32, #tpu.memory_space<vmem>>, vector<16x128xf32>,
    } else {
    }
    return
  }
  func.func @transform_0(%arg0: i32, %arg1: i32) -> (i32, i32) {
    %c0_i32 = arith.constant 0 : i32
    %c0_i32_0 = arith.constant 0 : i32
    return %arg0, %c0_i32 : i32, i32
  }
  func.func @transform_1(%arg0: i32, %arg1: i32) -> (i32, i32) {
    %c0_i32 = arith.constant 0 : i32
    %c0_i32_0 = arith.constant 0 : i32
    return %c0_i32, %arg1 : i32, i32
  }
  func.func @transform_2(%arg0: i32, %arg1: i32) -> (i32, i32) {
    %c0_i32 = arith.constant 0 : i32
    %c0_i32_0 = arith.constant 0 : i32
    return %arg1, %c0_i32 : i32, i32
  }
  func.func @transform_3(%arg0: i32, %arg1: i32) -> (i32, i32) {
    %c0_i32 = arith.constant 0 : i32
    %c0_i32_0 = arith.constant 0 : i32
    return %arg0, %c0_i32 : i32, i32
  }
}

</mosaic_0001>

<bundles_post_ra>
// kernel: gemma_mlp.1
= control target key start
LH: loop header
LB: loop body
LE: loop exit
PB: predicated region body
PF: predicated region fallthrough
CT: control target
= control target key end

     0   :  { %8 = vsyncpa [#allocation4], 0  ;;  %s687_s0 = inlined_call_operand.hbm [shape: f32[16,128], index: 0, kind: input, shape index: {}]   ;;  %s688_s1 = inlined_call_operand.hbm [shape: f32[128,512], index: 1, kind: input, shape index: {}]   ;;  %s689_s2 = inlined_call_operand.hbm [shape: f32[256,128], index: 2, kind: input, shape index: {}]   ;;  %s690_s3 = inlined_call_operand.hbm [shape: f32[16,128], index: 3, kind: output, shape index: {}]  }
   0x1   :  { %9 = vsyncpa [#allocation7], 0 }
   0x2   :  { %10 = vsyncpa [#allocation5], 0  ;;  %s633_s12 = smov [#allocation6]  }
   0x3   :  { %s28_s13 = sshll.u32 %s633_s12, 4  ;;  %s29_s13 = int_to_ptr.vmem [resolvable:$true] %s28_s13 }
   0x4   :  { %s555_s14 = scalar_lea.vmem %s29_s13, 8192  ;;  %p560_p1 = scmp.lt.s32.totalorder %s29_s13, %s29_s13 }
   0x5   :  { %p556_p0 = scmp.ne.s32.totalorder %s29_s13, %s555_s14  ;;  %p561_p2 = scmp.lt.s32.totalorder %s555_s14, %s555_s14 }
   0x7   :  { %p562_p3 = por %p561_p2, %p560_p1 }
   0x9   :  { %p563_p4 = pnand %p562_p3, %p556_p0 }
   0xb   :  { %566 = shalt.err (!%p563_p4)
}
   0xc   :  { %s634_s15 = smov 512   ;;  %s635_s16 = smov 32  }
   0xd   :  { %34 = dma.hbm_to_vmem [thread:$0]  %s688_s1, 8192, %s29_s13, [#allocation7], %s634_s15, %s634_s15, %s635_s16  }
   0xe   :  { %s636_s19 = smov [#allocation3]  }
   0xf   :  { %s16_s20 = sshll.u32 %s636_s19, 4  ;;  %s17_s20 = int_to_ptr.vmem [resolvable:$true] %s16_s20 }
  0x10   :  { %s575_s21 = scalar_lea.vmem %s17_s20, 256  ;;  %p580_p6 = scmp.lt.s32.totalorder %s17_s20, %s17_s20 }
  0x11   :  { %p576_p5 = scmp.ne.s32.totalorder %s17_s20, %s575_s21  ;;  %p581_p7 = scmp.lt.s32.totalorder %s575_s21, %s575_s21 }
  0x13   :  { %p582_p8 = por %p581_p7, %p580_p6 }
  0x15   :  { %p583_p9 = pnand %p582_p8, %p576_p5 }
  0x17   :  { %586 = shalt.err (!%p583_p9)
}
  0x18   :  { %s637_s22 = smov 128   ;;  %s638_s23 = smov 8  }
  0x19   :  { %22 = dma.hbm_to_vmem [thread:$0]  %s687_s0, 256, %s17_s20, [#allocation4], %s637_s22, %s637_s22, %s638_s23  }
  0x1a   :  { %s639_s1 = smov [#allocation8]  }
  0x1b   :  { %s40_s26 = sshll.u32 %s639_s1, 4  ;;  %s41_s26 = int_to_ptr.vmem [resolvable:$true] %s40_s26 }
  0x1c   :  { %s595_s27 = scalar_lea.vmem %s41_s26, 4096  ;;  %p600_p11 = scmp.lt.s32.totalorder %s41_s26, %s41_s26 }
  0x1d   :  { %p596_p10 = scmp.ne.s32.totalorder %s41_s26, %s595_s27  ;;  %p601_p12 = scmp.lt.s32.totalorder %s595_s27, %s595_s27 }
  0x1f   :  { %p602_p13 = por %p601_p12, %p600_p11 }
  0x21   :  { %p603_p0 = pnand %p602_p13, %p596_p10 }
  0x23   :  { %606 = shalt.err (!%p603_p0)
}
  0x24   :  { %46 = dma.hbm_to_vmem [thread:$0]  %s689_s2, 4096, %s41_s26, [#allocation7], %s637_s22, %s637_s22, %s638_s23  }
  0x25   :  { %627 = dma.done.wait [#allocation4], 256  }
  0x26   :  { %628 = vsyncadd [#allocation4], 4294967040 }
  0x27   :  { %629 = dma.done.wait [#allocation7], 12288  }
  0x28   :  { %630 = vsyncadd [#allocation7], 4294955008  ;;  %v640_v0 = vmov 0.0   ;;  %v125_v1 = vld [vmem:[#allocation6 + $0x1e8] sm:$0xff]  ;;  %v124_v2 = vld [vmem:[#allocation6 + $0x1e0] sm:$0xff]  ;;  %s641_s0 = smov [#allocation9]  }
  0x29   :  { %192 = vmatprep.mubr.f32.mxu0 %v640_v0  ;;  %269 = vmatprep.mubr.f32.mxu1 %v640_v0  ;;  %v121_v3 = vld [vmem:[#allocation6 + $0x1c8] sm:$0xff]  ;;  %v120_v4 = vld [vmem:[#allocation6 + $0x1c0] sm:$0xff]  ;;  %v127_v13 = vld [vmem:[#allocation6 + $0x1f8] sm:$0xff]  ;;  %s447_s2 = sshll.u32 %s641_s0, 4  ;;  %s448_s2 = int_to_ptr.vmem [resolvable:$true] %s447_s2 }
  0x2a   :  { %128 = vmatprep.subr.mxu0 %v125_v1  ;;  %v117_v5 = vld [vmem:[#allocation6 + $0x1a8] sm:$0xff]  ;;  %v116_v6 = vld [vmem:[#allocation6 + $0x1a0] sm:$0xff]  ;;  %205 = vmatprep.subr.mxu1 %v127_v13  ;;  %v126_v15 = vld [vmem:[#allocation6 + $0x1f0] sm:$0xff]  ;;  %s607_s30 = scalar_lea.vmem %s448_s2, 256  ;;  %p612_p2 = scmp.lt.s32.totalorder %s448_s2, %s448_s2 }
  0x2b   :  { %129 = vmatpush1.msra.mxu0 %v124_v2  ;;  %v113_v7 = vld [vmem:[#allocation6 + $0x188] sm:$0xff]  ;;  %v112_v8 = vld [vmem:[#allocation6 + $0x180] sm:$0xff]  ;;  %206 = vmatpush1.msra.mxu1 %v126_v15  ;;  %v123_v17 = vld [vmem:[#allocation6 + $0x1d8] sm:$0xff]  ;;  %p608_p1 = scmp.ne.s32.totalorder %s448_s2, %s607_s30  ;;  %p613_p3 = scmp.lt.s32.totalorder %s607_s30, %s607_s30 }
  0x2c   :  { %130 = vmatprep.subr.mxu0 %v121_v3  ;;  %v109_v9 = vld [vmem:[#allocation6 + $0x168] sm:$0xff]  ;;  %v108_v10 = vld [vmem:[#allocation6 + $0x160] sm:$0xff]  ;;  %v122_v18 = vld [vmem:[#allocation6 + $0x1d0] sm:$0xff]  ;;  %207 = vmatprep.subr.mxu1 %v123_v17 }
  0x2d   :  { %131 = vmatpush1.msra.mxu0 %v120_v4  ;;  %v105_v11 = vld [vmem:[#allocation6 + $0x148] sm:$0xff]  ;;  %v104_v12 = vld [vmem:[#allocation6 + $0x140] sm:$0xff]  ;;  %v119_v20 = vld [vmem:[#allocation6 + $0x1b8] sm:$0xff]  ;;  %208 = vmatpush1.msra.mxu1 %v122_v18  ;;  %p614_p4 = por %p613_p3, %p612_p2 }
  0x2e   :  { %132 = vmatprep.subr.mxu0 %v117_v5  ;;  %v101_v14 = vld [vmem:[#allocation6 + $0x128] sm:$0xff]  ;;  %v100_v16 = vld [vmem:[#allocation6 + $0x120] sm:$0xff]  ;;  %v118_v21 = vld [vmem:[#allocation6 + $0x1b0] sm:$0xff]  ;;  %209 = vmatprep.subr.mxu1 %v119_v20 }
  0x2f   :  { %133 = vmatpush1.msra.mxu0 %v116_v6  ;;  %v97_v19 = vld [vmem:[#allocation6 + $0x108] sm:$0xff]  ;;  %v96_v22 = vld [vmem:[#allocation6 + $0x100] sm:$0xff]  ;;  %v115_v23 = vld [vmem:[#allocation6 + $0x198] sm:$0xff]  ;;  %210 = vmatpush1.msra.mxu1 %v118_v21  ;;  %p615_p5 = pnand %p614_p4, %p608_p1 }
  0x30   :  { %134 = vmatprep.subr.mxu0 %v113_v7  ;;  %v93_v24 = vld [vmem:[#allocation6 + $0xe8] sm:$0xff]  ;;  %v114_v25 = vld [vmem:[#allocation6 + $0x190] sm:$0xff]  ;;  %v92_v26 = vld [vmem:[#allocation6 + $0xe0] sm:$0xff]  ;;  %211 = vmatprep.subr.mxu1 %v115_v23 }
  0x31   :  { %135 = vmatpush1.msra.mxu0 %v112_v8  ;;  %v111_v27 = vld [vmem:[#allocation6 + $0x178] sm:$0xff]  ;;  %v89_v28 = vld [vmem:[#allocation6 + $0xc8] sm:$0xff]  ;;  %v110_v29 = vld [vmem:[#allocation6 + $0x170] sm:$0xff]  ;;  %212 = vmatpush1.msra.mxu1 %v114_v25 }
  0x32   :  { %136 = vmatprep.subr.mxu0 %v109_v9  ;;  %v88_v30 = vld [vmem:[#allocation6 + $0xc0] sm:$0xff]  ;;  %v107_v31 = vld [vmem:[#allocation6 + $0x158] sm:$0xff]  ;;  %v85_v32 = vld [vmem:[#allocation6 + $0xa8] sm:$0xff]  ;;  %213 = vmatprep.subr.mxu1 %v111_v27 }
  0x33   :  { %137 = vmatpush1.msra.mxu0 %v108_v10  ;;  %v106_v33 = vld [vmem:[#allocation6 + $0x150] sm:$0xff]  ;;  %v84_v34 = vld [vmem:[#allocation6 + $0xa0] sm:$0xff]  ;;  %214 = vmatpush1.msra.mxu1 %v110_v29  ;;  %v103_v35 = vld [vmem:[#allocation6 + $0x138] sm:$0xff] }
  0x34   :  { %138 = vmatprep.subr.mxu0 %v105_v11  ;;  %v81_v36 = vld [vmem:[#allocation6 + $0x88] sm:$0xff]  ;;  %215 = vmatprep.subr.mxu1 %v107_v31  ;;  %v102_v37 = vld [vmem:[#allocation6 + $0x130] sm:$0xff]  ;;  %v80_v38 = vld [vmem:[#allocation6 + $0x80] sm:$0xff] }
  0x35   :  { %139 = vmatpush1.msra.mxu0 %v104_v12  ;;  %216 = vmatpush1.msra.mxu1 %v106_v33  ;;  %v99_v39 = vld [vmem:[#allocation6 + $0x118] sm:$0xff]  ;;  %v77_v40 = vld [vmem:[#allocation6 + $0x68] sm:$0xff]  ;;  %v98_v41 = vld [vmem:[#allocation6 + $0x110] sm:$0xff] }
  0x36   :  { %140 = vmatprep.subr.mxu0 %v101_v14  ;;  %217 = vmatprep.subr.mxu1 %v103_v35  ;;  %v76_v42 = vld [vmem:[#allocation6 + $0x60] sm:$0xff]  ;;  %v95_v43 = vld [vmem:[#allocation6 + $0xf8] sm:$0xff]  ;;  %v73_v44 = vld [vmem:[#allocation6 + $0x48] sm:$0xff] }
  0x37   :  { %141 = vmatpush1.msra.mxu0 %v100_v16  ;;  %218 = vmatpush1.msra.mxu1 %v102_v37  ;;  %v94_v45 = vld [vmem:[#allocation6 + $0xf0] sm:$0xff]  ;;  %v72_v46 = vld [vmem:[#allocation6 + $0x40] sm:$0xff]  ;;  %v91_v47 = vld [vmem:[#allocation6 + $0xd8] sm:$0xff] }
  0x38   :  { %142 = vmatprep.subr.mxu0 %v97_v19  ;;  %219 = vmatprep.subr.mxu1 %v99_v39  ;;  %v69_v48 = vld [vmem:[#allocation6 + $0x28] sm:$0xff]  ;;  %v90_v49 = vld [vmem:[#allocation6 + $0xd0] sm:$0xff]  ;;  %v68_v50 = vld [vmem:[#allocation6 + $0x20] sm:$0xff] }
  0x39   :  { %143 = vmatpush1.msra.mxu0 %v96_v22  ;;  %220 = vmatpush1.msra.mxu1 %v98_v41  ;;  %v87_v51 = vld [vmem:[#allocation6 + $0xb8] sm:$0xff]  ;;  %v65_v52 = vld [vmem:[#allocation6 + $0x8] sm:$0xff]  ;;  %v86_v53 = vld [vmem:[#allocation6 + $0xb0] sm:$0xff] }
  0x3a   :  { %144 = vmatprep.subr.mxu0 %v93_v24  ;;  %221 = vmatprep.subr.mxu1 %v95_v43  ;;  %v64_v54 = vld [vmem:[#allocation6] sm:$0xff]  ;;  %v83_v55 = vld [vmem:[#allocation6 + $0x98] sm:$0xff]  ;;  %v62_v56 = vld [vmem:[#allocation3] sm:$0xff] }
  0x3b   :  { %145 = vmatpush1.msra.mxu0 %v92_v26  ;;  %222 = vmatpush1.msra.mxu1 %v94_v45  ;;  %v82_v57 = vld [vmem:[#allocation6 + $0x90] sm:$0xff]  ;;  %v79_v58 = vld [vmem:[#allocation6 + $0x78] sm:$0xff]  ;;  %v353_v8 = vld [vmem:[#allocation8 + $0xe8] sm:$0xff] }
  0x3c   :  { %146 = vmatprep.subr.mxu0 %v89_v28  ;;  %223 = vmatprep.subr.mxu1 %v91_v47  ;;  %v78_v59 = vld [vmem:[#allocation6 + $0x70] sm:$0xff]  ;;  %v75_v60 = vld [vmem:[#allocation6 + $0x58] sm:$0xff]  ;;  %v337_v9 = vld [vmem:[#allocation8 + $0x68] sm:$0xff] }
  0x3d   :  { %147 = vmatpush1.msra.mxu0 %v88_v30  ;;  %224 = vmatpush1.msra.mxu1 %v90_v49  ;;  %v63_v61 = vld [vmem:[#allocation3 + $0x8] sm:$0xff]  ;;  %v74_v62 = vld [vmem:[#allocation6 + $0x50] sm:$0xff]  ;;  %v352_v10 = vld [vmem:[#allocation8 + $0xe0] sm:$0xff] }
  0x3e   :  { %148 = vmatprep.subr.mxu0 %v85_v32  ;;  %225 = vmatprep.subr.mxu1 %v87_v51  ;;  %v71_v63 = vld [vmem:[#allocation6 + $0x38] sm:$0xff]  ;;  %v70_v1 = vld [vmem:[#allocation6 + $0x30] sm:$0xff]  ;;  %v349_v15 = vld [vmem:[#allocation8 + $0xc8] sm:$0xff] }
  0x3f   :  { %149 = vmatpush1.msra.mxu0 %v84_v34  ;;  %226 = vmatpush1.msra.mxu1 %v86_v53  ;;  %v67_v2 = vld [vmem:[#allocation6 + $0x18] sm:$0xff]  ;;  %v66_v3 = vld [vmem:[#allocation6 + $0x10] sm:$0xff]  ;;  %v333_v16 = vld [vmem:[#allocation8 + $0x48] sm:$0xff] }
  0x40   :  { %150 = vmatprep.subr.mxu0 %v81_v36  ;;  %227 = vmatprep.subr.mxu1 %v83_v55  ;;  %v355_v4 = vld [vmem:[#allocation8 + $0xf8] sm:$0xff]  ;;  %v354_v6 = vld [vmem:[#allocation8 + $0xf0] sm:$0xff]  ;;  %v348_v17 = vld [vmem:[#allocation8 + $0xc0] sm:$0xff] }
  0x41   :  { %151 = vmatpush1.msra.mxu0 %v80_v38  ;;  %228 = vmatpush1.msra.mxu1 %v82_v57  ;;  %v339_v5 = vld [vmem:[#allocation8 + $0x78] sm:$0xff]  ;;  %v338_v7 = vld [vmem:[#allocation8 + $0x70] sm:$0xff]  ;;  %v332_v18 = vld [vmem:[#allocation8 + $0x40] sm:$0xff] }
  0x42   :  { %152 = vmatprep.subr.mxu0 %v77_v40  ;;  %229 = vmatprep.subr.mxu1 %v79_v58  ;;  %v351_v11 = vld [vmem:[#allocation8 + $0xd8] sm:$0xff]  ;;  %v350_v13 = vld [vmem:[#allocation8 + $0xd0] sm:$0xff]  ;;  %v345_v23 = vld [vmem:[#allocation8 + $0xa8] sm:$0xff] }
  0x43   :  { %153 = vmatpush1.msra.mxu0 %v76_v42  ;;  %230 = vmatpush1.msra.mxu1 %v78_v59  ;;  %v335_v12 = vld [vmem:[#allocation8 + $0x58] sm:$0xff]  ;;  %v334_v14 = vld [vmem:[#allocation8 + $0x50] sm:$0xff]  ;;  %v329_v24 = vld [vmem:[#allocation8 + $0x28] sm:$0xff] }
  0x44   :  { %154 = vmatprep.subr.mxu0 %v73_v44  ;;  %231 = vmatprep.subr.mxu1 %v75_v60  ;;  %v347_v19 = vld [vmem:[#allocation8 + $0xb8] sm:$0xff]  ;;  %v346_v21 = vld [vmem:[#allocation8 + $0xb0] sm:$0xff]  ;;  %v344_v25 = vld [vmem:[#allocation8 + $0xa0] sm:$0xff] }
  0x45   :  { %155 = vmatpush1.msra.mxu0 %v72_v46  ;;  %232 = vmatpush1.msra.mxu1 %v74_v62  ;;  %v331_v20 = vld [vmem:[#allocation8 + $0x38] sm:$0xff]  ;;  %v330_v22 = vld [vmem:[#allocation8 + $0x30] sm:$0xff]  ;;  %v328_v26 = vld [vmem:[#allocation8 + $0x20] sm:$0xff] }
  0x46   :  { %156 = vmatprep.subr.mxu0 %v69_v48  ;;  %233 = vmatprep.subr.mxu1 %v71_v63  ;;  %v343_v27 = vld [vmem:[#allocation8 + $0x98] sm:$0xff]  ;;  %v342_v29 = vld [vmem:[#allocation8 + $0x90] sm:$0xff]  ;;  %v341_v31 = vld [vmem:[#allocation8 + $0x88] sm:$0xff] }
  0x47   :  { %157 = vmatpush1.msra.mxu0 %v68_v50  ;;  %234 = vmatpush1.msra.mxu1 %v70_v1  ;;  %v327_v28 = vld [vmem:[#allocation8 + $0x18] sm:$0xff]  ;;  %v326_v30 = vld [vmem:[#allocation8 + $0x10] sm:$0xff]  ;;  %v325_v32 = vld [vmem:[#allocation8 + $0x8] sm:$0xff] }
  0x48   :  { %158 = vmatprep.subr.mxu0 %v65_v52  ;;  %235 = vmatprep.subr.mxu1 %v67_v2  ;;  %v340_v33 = vld [vmem:[#allocation8 + $0x80] sm:$0xff] }
  0x49   :  { %159 = vmatpush1.msra.mxu0 %v64_v54  ;;  %236 = vmatpush1.msra.mxu1 %v66_v3  ;;  %v324_v34 = vld [vmem:[#allocation8] sm:$0xff] }
  0x4a   :  { %193 = vmatmul.mubr.f32.vlgmr.msra.gmra.mxu0 %v62_v56  ;;  %270 = vmatmul.mubr.f32.vlgmr.msra.gmra.mxu1 %v62_v56 }
  0x4b   :  { %198 = vmatprep.mubr.f32.mxu0 %v640_v0  ;;  %275 = vmatprep.mubr.f32.mxu1 %v640_v0  ;;  %v336_v0 = vld [vmem:[#allocation8 + $0x60] sm:$0xff] }
  0x4c   :  { %460 = vmatprep.subr.mxu0 %v355_v4  ;;  %498 = vmatprep.subr.mxu1 %v355_v4 }
  0x4d   :  { %461 = vmatpush3.msra.mxu0 %v339_v5  ;;  %514 = vmatpush3.msra.mxu1 %v339_v5 }
  0x4e   :  { %199 = vmatmul.mubr.f32.gmra.mxu0 %v63_v61  ;;  %276 = vmatmul.mubr.f32.gmra.mxu1 %v63_v61 }
  0x4f   :  { %462 = vmatprep.subr.mxu0 %v354_v6  ;;  %499 = vmatprep.subr.mxu1 %v354_v6 }
  0x50   :  { %463 = vmatpush3.msra.mxu0 %v338_v7  ;;  %515 = vmatpush3.msra.mxu1 %v338_v7 }
  0x51   :  { %464 = vmatprep.subr.mxu0 %v353_v8  ;;  %500 = vmatprep.subr.mxu1 %v353_v8 }
  0x52   :  { %465 = vmatpush3.msra.mxu0 %v337_v9  ;;  %516 = vmatpush3.msra.mxu1 %v337_v9 }
  0x53   :  { %466 = vmatprep.subr.mxu0 %v352_v10  ;;  %501 = vmatprep.subr.mxu1 %v352_v10 }
  0x54   :  { %467 = vmatpush3.msra.mxu0 %v336_v0  ;;  %517 = vmatpush3.msra.mxu1 %v336_v0 }
  0x55   :  { %468 = vmatprep.subr.mxu0 %v351_v11  ;;  %502 = vmatprep.subr.mxu1 %v351_v11 }
  0x56   :  { %469 = vmatpush3.msra.mxu0 %v335_v12  ;;  %518 = vmatpush3.msra.mxu1 %v335_v12 }
  0x57   :  { %470 = vmatprep.subr.mxu0 %v350_v13  ;;  %503 = vmatprep.subr.mxu1 %v350_v13 }
  0x58   :  { %471 = vmatpush3.msra.mxu0 %v334_v14  ;;  %519 = vmatpush3.msra.mxu1 %v334_v14 }
  0x59   :  { %472 = vmatprep.subr.mxu0 %v349_v15  ;;  %504 = vmatprep.subr.mxu1 %v349_v15 }
  0x5a   :  { %473 = vmatpush3.msra.mxu0 %v333_v16  ;;  %520 = vmatpush3.msra.mxu1 %v333_v16 }
  0x5b   :  { %474 = vmatprep.subr.mxu0 %v348_v17  ;;  %505 = vmatprep.subr.mxu1 %v348_v17 }
  0x5c   :  { %475 = vmatpush3.msra.mxu0 %v332_v18  ;;  %521 = vmatpush3.msra.mxu1 %v332_v18 }
  0x5d   :  { %476 = vmatprep.subr.mxu0 %v347_v19  ;;  %506 = vmatprep.subr.mxu1 %v347_v19 }
  0x5e   :  { %477 = vmatpush3.msra.mxu0 %v331_v20  ;;  %522 = vmatpush3.msra.mxu1 %v331_v20 }
  0x5f   :  { %478 = vmatprep.subr.mxu0 %v346_v21  ;;  %507 = vmatprep.subr.mxu1 %v346_v21 }
  0x60   :  { %479 = vmatpush3.msra.mxu0 %v330_v22  ;;  %523 = vmatpush3.msra.mxu1 %v330_v22 }
  0x61   :  { %480 = vmatprep.subr.mxu0 %v345_v23  ;;  %508 = vmatprep.subr.mxu1 %v345_v23 }
  0x62   :  { %481 = vmatpush3.msra.mxu0 %v329_v24  ;;  %524 = vmatpush3.msra.mxu1 %v329_v24 }
  0x63   :  { %482 = vmatprep.subr.mxu0 %v344_v25  ;;  %509 = vmatprep.subr.mxu1 %v344_v25 }
  0x64   :  { %483 = vmatpush3.msra.mxu0 %v328_v26  ;;  %525 = vmatpush3.msra.mxu1 %v328_v26 }
  0x65   :  { %484 = vmatprep.subr.mxu0 %v343_v27  ;;  %510 = vmatprep.subr.mxu1 %v343_v27 }
  0x66   :  { %485 = vmatpush3.msra.mxu0 %v327_v28  ;;  %526 = vmatpush3.msra.mxu1 %v327_v28 }
  0x67   :  { %486 = vmatprep.subr.mxu0 %v342_v29  ;;  %511 = vmatprep.subr.mxu1 %v342_v29 }
  0x68   :  { %487 = vmatpush3.msra.mxu0 %v326_v30  ;;  %527 = vmatpush3.msra.mxu1 %v326_v30 }
  0x69   :  { %488 = vmatprep.subr.mxu0 %v341_v31  ;;  %512 = vmatprep.subr.mxu1 %v341_v31 }
  0x6a   :  { %489 = vmatpush3.msra.mxu0 %v325_v32  ;;  %528 = vmatpush3.msra.mxu1 %v325_v32 }
  0x6b   :  { %490 = vmatprep.subr.mxu0 %v340_v33  ;;  %513 = vmatprep.subr.mxu1 %v340_v33 }
  0x6c   :  { %491 = vmatpush3.msra.mxu0 %v324_v34  ;;  %529 = vmatpush3.msra.mxu1 %v324_v34 }
 0x10a   :  { %v194_v35 = vpop.f32.mrf.mxu0  ;;  %v271_v60 = vpop.f32.mrf.mxu1 }
 0x10b   :  { %v282_v36 = vmul.f32 %v194_v35, %v194_v35 }
 0x10c   :  { %v196_v37 = vpop.f32.mrf.mxu0  ;;  %v273_v3 = vpop.f32.mrf.mxu1 }
 0x10d   :  { %v286_v38 = vmul.f32 %v282_v36, %v194_v35  ;;  %v283_v39 = vmul.f32 %v196_v37, %v196_v37 }
 0x10e   :  { %v200_v40 = vpop.f32.mrf.mxu0  ;;  %v277_v0 = vpop.f32.mrf.mxu1 }
 0x10f   :  { %v290_v41 = vmul.f32 0.044715, %v286_v38  ;;  %v287_v42 = vmul.f32 %v283_v39, %v196_v37  ;;  %v284_v43 = vmul.f32 %v200_v40, %v200_v40 }
 0x110   :  { %v202_v44 = vpop.f32.mrf.mxu0  ;;  %v279_v16 = vpop.f32.mrf.mxu1 }
 0x111   :  { %v294_v45 = vadd.f32 %v290_v41, %v194_v35  ;;  %v291_v46 = vmul.f32 0.044715, %v287_v42  ;;  %v288_v47 = vmul.f32 %v284_v43, %v200_v40  ;;  %v285_v48 = vmul.f32 %v202_v44, %v202_v44 }
 0x113   :  { %v298_v49 = vmul.f32 0.7978846, %v294_v45  ;;  %v295_v50 = vadd.f32 %v291_v46, %v196_v37  ;;  %v292_v51 = vmul.f32 0.044715, %v288_v47  ;;  %v289_v52 = vmul.f32 %v285_v48, %v202_v44 }
 0x115   :  { %539 = vtanh.f32 %v298_v49  ;;  %v299_v53 = vmul.f32 0.7978846, %v295_v50  ;;  %v296_v54 = vadd.f32 %v292_v51, %v200_v40  ;;  %v293_v55 = vmul.f32 0.044715, %v289_v52 }
 0x117   :  { %541 = vtanh.f32 %v299_v53  ;;  %v300_v56 = vmul.f32 0.7978846, %v296_v54  ;;  %v297_v57 = vadd.f32 %v293_v55, %v202_v44 }
 0x119   :  { %543 = vtanh.f32 %v300_v56  ;;  %v301_v58 = vmul.f32 0.7978846, %v297_v57 }
 0x11b   :  { %545 = vtanh.f32 %v301_v58 }
 0x122   :  { %v540_v59 = vpop.eup %539 }
 0x123   :  { %v306_v61 = vadd.f32 1.0, %v540_v59 }
 0x124   :  { %v542_v62 = vpop.eup %541 }
 0x125   :  { %v310_v63 = vmul.f32 0.5, %v306_v61  ;;  %v307_v1 = vadd.f32 1.0, %v542_v62 }
 0x126   :  { %v544_v2 = vpop.eup %543 }
 0x127   :  { %v311_v4 = vmul.f32 0.5, %v307_v1  ;;  %v308_v5 = vadd.f32 1.0, %v544_v2  ;;  %v314_v7 = vmul.f32 %v310_v63, %v194_v35 }
 0x128   :  { %v546_v6 = vpop.eup %545 }
 0x129   :  { %v315_v8 = vmul.f32 %v311_v4, %v196_v37  ;;  %v312_v9 = vmul.f32 0.5, %v308_v5  ;;  %v309_v10 = vadd.f32 1.0, %v546_v6  ;;  %v318_v13 = vmul.f32 %v314_v7, %v271_v60 }
 0x12b   :  { %v319_v11 = vmul.f32 %v315_v8, %v273_v3  ;;  %v313_v12 = vmul.f32 0.5, %v309_v10  ;;  %v316_v14 = vmul.f32 %v312_v9, %v200_v40 }
 0x12d   :  { %v317_v15 = vmul.f32 %v313_v12, %v202_v44  ;;  %420 = vmatprep.mubr.f32.mxu0 %v319_v11  ;;  %v320_v18 = vmul.f32 %v316_v14, %v277_v0 }
 0x12e   :  { %421 = vmatmul.mubr.f32.vlgmr.msra.gmra.mxu0 %v318_v13 }
 0x12f   :  { %v321_v17 = vmul.f32 %v317_v15, %v279_v16 }
 0x131   :  { %425 = vmatprep.mubr.f32.mxu1 %v321_v17 }
 0x132   :  { %426 = vmatmul.mubr.f32.vlgmr.msra.gmra.mxu1 %v320_v18 }
 0x1ee   :  { %v492_v19 = vpop.f32.mrf.mxu0 }
 0x1f0   :  { %v493_v20 = vpop.f32.mrf.mxu0 }
 0x1f1   :  { %v494_v21 = vadd.f32 %v493_v20, %v492_v19 }
 0x1f2   :  { %v495_v22 = vpop.f32.mrf.mxu1 }
 0x1f3   :  { %440 = vst [vmem:[#allocation9] sm:$0xff] %v494_v21 }
 0x1f4   :  { %v496_v23 = vpop.f32.mrf.mxu1 }
 0x1f5   :  { %v497_v24 = vadd.f32 %v496_v23, %v495_v22 }
 0x1f7   :  { %441 = vst [vmem:[#allocation9 + $0x8] sm:$0xff] %v497_v24 }
 0x1f8   :  { %618 = shalt.err (!%p615_p5)
}
 0x1f9   :  { %453 = dma.vmem_to_hbm [thread:$0]  %s448_s2, 256, %s690_s3, [#allocation5], %s637_s22, %s637_s22, %s638_s23  }
 0x1fa   :  { %631 = dma.done.wait [#allocation5], 256  }
 0x1fb   :  { %632 = vsyncadd [#allocation5], 4294967040 }
 0x1fc   :  { %457 = vsyncpa [#allocation4], 1 }
 0x1fd   :  { %458 = vsyncpa [#allocation7], 1 }
 0x1fe   :  { %459 = vsyncpa [#allocation5], 1 }

</bundles_post_ra>
